<compile_context>
chip_gen: v6e
topology: v6e:2x2x1
jax: 0.10.0
libtpu: 0.0.40
codegen_flags: <defaults>
</compile_context>

<pallas_src>
import functools
import math

import jax
import jax.numpy as jnp
import numpy as np
from jax import lax
from jax.experimental import pallas as pl
from jax.experimental.pallas import tpu as pltpu


def _round_up(a: int, b: int) -> int:
    return -(-a // b) * b


# ---------------------------------------------------------------------------
# Encode, path A: small vocab -> VMEM-resident table, one-hot MXU gather.
# ---------------------------------------------------------------------------
def _encode_onehot_kernel(idx_ref, tab_ref, out_ref, *, scale):
    idx = idx_ref[...]                                     # (tt, 1) int32
    tt = idx.shape[0]
    V = tab_ref.shape[0]
    iota = lax.broadcasted_iota(jnp.int32, (tt, V), 1)
    onehot = (idx == iota).astype(tab_ref.dtype)           # exact row selector
    acc = jnp.dot(onehot, tab_ref[...], preferred_element_type=jnp.float32)
    out_ref[...] = (acc * scale).astype(out_ref.dtype)


# ---------------------------------------------------------------------------
# Encode, path B: large vocab -> double-buffered HBM row-gather DMA.
# ---------------------------------------------------------------------------
def _encode_gather_kernel(idx_ref, tab_hbm, out_ref, buf, sem, *, tt, scale):
    i = pl.program_id(0)
    nsteps = pl.num_programs(0)

    def issue(tile_idx, slot):
        base = tile_idx * tt

        @pl.loop(0, tt)
        def _(j):
            row = idx_ref[base + j]                        # scalar SMEM read
            pltpu.make_async_copy(
                tab_hbm.at[pl.ds(row, 1)],                 # one (1, D) HBM row
                buf.at[slot, pl.ds(j, 1)],
                sem.at[slot, j],
            ).start()

    # Prime slot 0 on the first step, then always prefetch the next tile.
    @pl.when(i == 0)
    def _():
        issue(0, 0)

    @pl.when(i + 1 < nsteps)
    def _():
        issue(i + 1, (i + 1) % 2)

    slot = i % 2

    @pl.loop(0, tt)
    def _(j):
        pltpu.make_async_copy(
            tab_hbm.at[pl.ds(0, 1)],                       # shape/bytes only
            buf.at[slot, pl.ds(j, 1)],
            sem.at[slot, j],
        ).wait()

    out_ref[...] = (buf[slot].astype(jnp.float32) * scale).astype(out_ref.dtype)


def embedder_encode(indices, table, *, tt=128, vmem_table_bytes=4 * 1024 * 1024,
                    force_hbm_gather=False):
    V, D = table.shape
    orig_shape = indices.shape
    # Guard against OOB DMA / OOB one-hot rows (torch would raise; we clamp).
    idx = jnp.clip(indices.reshape(-1).astype(jnp.int32), 0, V - 1)
    T = idx.shape[0]
    scale = float(math.sqrt(D))

    table_bytes = V * D * table.dtype.itemsize
    use_vmem_table = (not force_hbm_gather) and table_bytes <= vmem_table_bytes and V <= 4096

    # Token tile: multiple of 32 so sublane packing works for f32/bf16/int8.
    tt_eff = max(32, min(int(tt) // 32 * 32, _round_up(T, 32)))
    Tp = _round_up(T, tt_eff)
    if Tp != T:
        idx = jnp.pad(idx, (0, Tp - T))

    if use_vmem_table:
        idx2 = idx.reshape(Tp, 1)
        out = pl.pallas_call(
            functools.partial(_encode_onehot_kernel, scale=scale),
            out_shape=jax.ShapeDtypeStruct((Tp, D), table.dtype),
            grid=(Tp // tt_eff,),
            in_specs=[
                pl.BlockSpec((tt_eff, 1), lambda i: (i, 0)),
                pl.BlockSpec((V, D), lambda i: (0, 0)),     # table VMEM-resident
            ],
            out_specs=pl.BlockSpec((tt_eff, D), lambda i: (i, 0)),
            compiler_params=pltpu.CompilerParams(dimension_semantics=("parallel",)),
        )(idx2, table)
    else:
        out = pl.pallas_call(
            functools.partial(_encode_gather_kernel, tt=tt_eff, scale=scale),
            out_shape=jax.ShapeDtypeStruct((Tp, D), table.dtype),
            grid_spec=pltpu.PrefetchScalarGridSpec(
                num_scalar_prefetch=1,                      # indices -> SMEM
                grid=(Tp // tt_eff,),
                in_specs=[pl.BlockSpec(memory_space=pl.ANY)],   # table stays in HBM
                out_specs=pl.BlockSpec((tt_eff, D), lambda i, idx_ref: (i, 0)),
                scratch_shapes=[
                    pltpu.VMEM((2, tt_eff, D), table.dtype),    # double buffer
                    pltpu.SemaphoreType.DMA((2, tt_eff)),
                ],
            ),
            # Sequential: the cross-step double-buffer state lives in scratch.
            compiler_params=pltpu.CompilerParams(dimension_semantics=("arbitrary",)),
        )(idx, table)

    return out[:T].reshape(*orig_shape, D)


# ---------------------------------------------------------------------------
# Decode: logits = x @ table.T, tiled over token and vocab dims.
# ---------------------------------------------------------------------------
def _decode_kernel(x_ref, tab_ref, out_ref):
    out_ref[...] = lax.dot_general(
        x_ref[...], tab_ref[...],
        dimension_numbers=(((1,), (1,)), ((), ())),         # contract D with D
        preferred_element_type=jnp.float32,
    ).astype(out_ref.dtype)


def _pick_vocab_tile(Vp, max_tv):
    # Vp is a multiple of 128; pick the largest multiple of 128 <= max_tv dividing Vp.
    for cand in range(min(max_tv, Vp), 0, -128):
        if Vp % cand == 0:
            return cand
    return 128


def embedder_decode(x, table, *, vocab_size=None, tn=256, max_tv=512):
    Vt, D = table.shape
    V = Vt if vocab_size is None else vocab_size
    orig_shape = x.shape
    xf = x.reshape(-1, D)
    N = xf.shape[0]

    # Table should already be 128-aligned (Embedder pads once at init); if not,
    # pad at most 127 rows here.
    Vp = _round_up(Vt, 128)
    if Vp != Vt:
        table = jnp.pad(table, ((0, Vp - Vt), (0, 0)))

    # Keep double-buffered table tiles modest when D is very large (v7x VMEM).
    if 2 * 512 * D * table.dtype.itemsize > 16 * 1024 * 1024:
        max_tv = min(max_tv, 256)
    tv = _pick_vocab_tile(Vp, max_tv)

    if N >= tn:
        Np = _round_up(N, tn)
        tn_eff = tn
    else:
        Np = _round_up(N, 32)
        tn_eff = Np
    xp = jnp.pad(xf, ((0, Np - N), (0, 0))) if Np != N else xf

    need = (2 * tn_eff * D * xp.dtype.itemsize
            + 2 * tv * D * table.dtype.itemsize
            + 2 * tn_eff * tv * 4)
    vmem_limit = int(min(max(need + (4 << 20), 16 << 20), 64 << 20))

    out = pl.pallas_call(
        _decode_kernel,
        out_shape=jax.ShapeDtypeStruct((Np, Vp), jnp.float32),
        grid=(Np // tn_eff, Vp // tv),
        in_specs=[
            pl.BlockSpec((tn_eff, D), lambda i, j: (i, 0)),   # activations tile
            pl.BlockSpec((tv, D), lambda i, j: (j, 0)),       # vocab tile of table
        ],
        out_specs=pl.BlockSpec((tn_eff, tv), lambda i, j: (i, j)),
        compiler_params=pltpu.CompilerParams(
            dimension_semantics=("parallel", "parallel"),
            vmem_limit_bytes=vmem_limit,
        ),
    )(xp, table)

    out = out[:N, :V]
    return out.reshape(*orig_shape[:-1], V)


# ---------------------------------------------------------------------------
# Module-equivalent wrapper
# ---------------------------------------------------------------------------
class Embedder:
    def __init__(self, vocab_size, embedding_features, key):
        self.vocab_size = vocab_size
        self.embedding_features = embedding_features
        # deterministic init, matches torch.randn(V, D) * 0.01 in distribution
        self.embedding_table = (
            jax.random.normal(key, (vocab_size, embedding_features), jnp.float32) * 0.01
        )
        # Pad the decode table ONCE (<=127 zero rows) so decode never pads per call.
        Vp = _round_up(vocab_size, 128)
        if Vp != vocab_size:
            self._decode_table = jnp.pad(self.embedding_table, ((0, Vp - vocab_size), (0, 0)))
        else:
            self._decode_table = self.embedding_table
        # TODO(synk): optionally keep a bf16 copy of the table for bandwidth-bound
        # decode; kept f32 here to match the PyTorch module's float32 parameter.

    def __call__(self, x, decode: bool):
        if decode:
            return embedder_decode(x, self._decode_table, vocab_size=self.vocab_size)
        return embedder_encode(x, self.embedding_table)


if __name__ == "__main__":
    VOCAB, D = 256, 128
    B, S = 2, 8

    key = jax.random.PRNGKey(0)
    k_tab, k_idx, k_x = jax.random.split(key, 3)

    emb = Embedder(VOCAB, D, k_tab)

    # --- encode path (small-vocab VMEM-resident fast path) ---
    indices = jax.random.randint(k_idx, (B, S), 0, VOCAB, dtype=jnp.int32)
    enc = jax.block_until_ready(emb(indices, decode=False))
    enc_ref = emb.embedding_table[indices] * math.sqrt(D)
    assert enc.shape == (B, S, D)
    np.testing.assert_allclose(np.asarray(enc), np.asarray(enc_ref), rtol=1e-5, atol=1e-5)

    # --- encode path (force the large-vocab HBM DMA gather path) ---
    enc2 = jax.block_until_ready(
        embedder_encode(indices, emb.embedding_table, force_hbm_gather=True))
    np.testing.assert_allclose(np.asarray(enc2), np.asarray(enc_ref), rtol=1e-5, atol=1e-5)

    # --- decode path ---
    x = jax.random.normal(k_x, (B, S, D), jnp.float32)
    dec = jax.block_until_ready(emb(x, decode=True))
    dec_ref = jnp.einsum("bsd,vd->bsv", x, emb.embedding_table)
    assert dec.shape == (B, S, VOCAB)
    np.testing.assert_allclose(np.asarray(dec), np.asarray(dec_ref), rtol=1e-4, atol=1e-4)

    print("KERNEL_OK")
</pallas_src>

<mosaic_0001>
module attributes {stable_mosaic.version = 11 : i64} {
  func.func @_encode_onehot_kernel(%arg0: i32, %arg1: memref<32x1xi32, #tpu.memory_space<vmem>>, %arg2: memref<256x128xf32, #tpu.memory_space<vmem>>, %arg3: memref<32x128xf32, #tpu.memory_space<vmem>>) attributes {dimension_semantics = [#tpu.dimension_semantics<parallel>], iteration_bounds = array<i64: 1>, scalar_prefetch = 0 : i64, scratch_operands = 0 : i64, tpu.core_type = #tpu.core_type<tc>, window_params = [{transform_indices = @transform_0, window_bounds = array<i64: 32, 1>}, {pipeline_mode = #tpu.pipeline_mode<synchronous>, transform_indices = @transform_1, window_bounds = array<i64: 256, 128>}, {transform_indices = @transform_2, window_bounds = array<i64: 32, 128>}]} {
    %c0 = arith.constant 0 : index
    %c0_0 = arith.constant 0 : index
    %0 = vector.load %arg1[%c0, %c0_0] : memref<32x1xi32, #tpu.memory_space<vmem>>, vector<32x1xi32>
    %1 = tpu.iota {dimensions = array<i32: 1>} : vector<32x256xi32>
    %2 = vector.broadcast %0 : vector<32x1xi32> to vector<32x256xi32>
    %3 = arith.cmpi eq, %2, %1 : vector<32x256xi32>
    %4 = arith.extui %3 : vector<32x256xi1> to vector<32x256xi32>
    %5 = arith.sitofp %4 : vector<32x256xi32> to vector<32x256xf32>
    %c0_1 = arith.constant 0 : index
    %c0_2 = arith.constant 0 : index
    %6 = vector.load %arg2[%c0_1, %c0_2] : memref<256x128xf32, #tpu.memory_space<vmem>>, vector<256x128xf32>
    %cst = arith.constant dense<0.000000e+00> : vector<32x128xf32>
    %7 = tpu.matmul %5, %6, %cst {dimension_numbers = #tpu.dot_dimension_numbers<[1], [0], [0], [1], [0, 0, 1, 1], [], []>} : vector<32x256xf32>, vector<256x128xf32>, vector<32x128xf32> -> vector<32x128xf32>
    %cst_3 = arith.constant 11.3137083 : f32
    %8 = vector.broadcast %cst_3 : f32 to vector<32x128xf32>
    %9 = arith.mulf %7, %8 : vector<32x128xf32>
    %c0_4 = arith.constant 0 : index
    %c0_5 = arith.constant 0 : index
    %10 = vector.load %arg3[%c0_4, %c0_5] : memref<32x128xf32, #tpu.memory_space<vmem>>, vector<32x128xf32>
    tpu.vector_store %arg3[%c0_4, %c0_5], %9 {strides = array<i32>} : memref<32x128xf32, #tpu.memory_space<vmem>>, vector<32x128xf32>,
    return
  }
  func.func @transform_0(%arg0: i32) -> (i32, i32) {
    %c0_i32 = arith.constant 0 : i32
    %c0_i32_0 = arith.constant 0 : i32
    return %arg0, %c0_i32 : i32, i32
  }
  func.func @transform_1(%arg0: i32) -> (i32, i32) {
    %c0_i32 = arith.constant 0 : i32
    %c0_i32_0 = arith.constant 0 : i32
    %c0_i32_1 = arith.constant 0 : i32
    return %c0_i32, %c0_i32_0 : i32, i32
  }
  func.func @transform_2(%arg0: i32) -> (i32, i32) {
    %c0_i32 = arith.constant 0 : i32
    %c0_i32_0 = arith.constant 0 : i32
    return %arg0, %c0_i32 : i32, i32
  }
}

</mosaic_0001>

<bundles_post_ra>
// kernel: tpu_custom_call.1
= control target key start
LH: loop header
LB: loop body
LE: loop exit
PB: predicated region body
PF: predicated region fallthrough
CT: control target
= control target key end

     0   :  { %7 = vsyncpa [#allocation3], 0  ;;  %s400_s0 = inlined_call_operand.vmem [shape: s32[32,1], index: 0, kind: input, shape index: {}]   ;;  %s401_s1 = inlined_call_operand.hbm [shape: f32[256,128], index: 1, kind: input, shape index: {}]   ;;  %s402_s2 = inlined_call_operand.hbm [shape: f32[32,128], index: 2, kind: output, shape index: {}]  }
   0x1   :  { %8 = vsyncpa [#allocation4], 0  ;;  %s355_s9 = smov [#allocation2]  }
   0x2   :  { %s16_s10 = sshll.u32 %s355_s9, 4  ;;  %s17_s10 = int_to_ptr.vmem [resolvable:$true] %s16_s10 }
   0x3   :  { %s319_s11 = scalar_lea.vmem %s17_s10, 4096  ;;  %p324_p1 = scmp.lt.s32.totalorder %s17_s10, %s17_s10 }
   0x4   :  { %p320_p0 = scmp.ne.s32.totalorder %s17_s10, %s319_s11  ;;  %p325_p2 = scmp.lt.s32.totalorder %s319_s11, %s319_s11 }
   0x6   :  { %p326_p3 = por %p325_p2, %p324_p1 }
   0x8   :  { %p327_p4 = pnand %p326_p3, %p320_p0 }
   0xa   :  { %330 = shalt.err (!%p327_p4)
}
   0xb   :  { %s356_s12 = smov 128   ;;  %s357_s13 = smov 8  }
   0xc   :  { %22 = dma.hbm_to_vmem [thread:$0]  %s401_s1, 4096, %s17_s10, [#allocation3], %s356_s12, %s356_s12, %s357_s13  }
   0xd   :  { %351 = dma.done.wait [#allocation3], 4096  }
   0xe   :  { %352 = vsyncadd [#allocation3], 4294963200  ;;  %v358_v0 = vmov 0   ;;  %v27_v1 = vld [vmem:[%s400_s0 + $0x8] sm:$0xff]  ;;  %v26_v2 = vld [vmem:[%s400_s0] sm:$0xff]  ;;  %v30_v37 = vlaneseq  ;;  %v359_v42 = vmov 1.0  }
   0xf   :  { %310 = vset.pattern.permute.xlu1 %v358_v0  ;;  %309 = vset.pattern.permute.xlu0 %v358_v0  ;;  %v100_v3 = vld [vmem:[#allocation2 + $0xf8] sm:$0xff]  ;;  %v28_v6 = vld [vmem:[%s400_s0 + $0x10] sm:$0xff]  ;;  %v98_v9 = vld [vmem:[#allocation2 + $0xe8] sm:$0xff] }
  0x10   :  { %37 = vperm.xlu1 %310, %v27_v1   ;;  %34 = vperm.xlu0 %309, %v26_v2   ;;  %v84_v4 = vld [vmem:[#allocation2 + $0x78] sm:$0xff]  ;;  %v99_v7 = vld [vmem:[#allocation2 + $0xf0] sm:$0xff]  ;;  %v82_v10 = vld [vmem:[#allocation2 + $0x68] sm:$0xff]  ;;  %v31_v38 = vand.u32 127, %v30_v37 }
  0x11   :  { %v29_v5 = vld [vmem:[%s400_s0 + $0x18] sm:$0xff]  ;;  %227 = vmatprep.subr.mxu0 %v100_v3  ;;  %271 = vmatprep.subr.mxu1 %v100_v3  ;;  %v83_v8 = vld [vmem:[#allocation2 + $0x70] sm:$0xff]  ;;  %v97_v11 = vld [vmem:[#allocation2 + $0xe0] sm:$0xff]  ;;  %s360_s0 = smov [#allocation5]  }
  0x12   :  { %228 = vmatpush3.msra.mxu0 %v84_v4  ;;  %287 = vmatpush3.msra.mxu1 %v84_v4  ;;  %v81_v12 = vld [vmem:[#allocation2 + $0x60] sm:$0xff]  ;;  %v96_v13 = vld [vmem:[#allocation2 + $0xd8] sm:$0xff]  ;;  %v95_v15 = vld [vmem:[#allocation2 + $0xd0] sm:$0xff]  ;;  %v32_v39 = vadd.s32 128, %v31_v38  ;;  %s199_s23 = sshll.u32 %s360_s0, 4  ;;  %s200_s23 = int_to_ptr.vmem [resolvable:$true] %s199_s23 }
  0x13   :  { %229 = vmatprep.subr.mxu0 %v99_v7  ;;  %272 = vmatprep.subr.mxu1 %v99_v7  ;;  %v80_v14 = vld [vmem:[#allocation2 + $0x58] sm:$0xff]  ;;  %v79_v16 = vld [vmem:[#allocation2 + $0x50] sm:$0xff]  ;;  %v94_v17 = vld [vmem:[#allocation2 + $0xc8] sm:$0xff]  ;;  %s331_s24 = scalar_lea.vmem %s200_s23, 512  ;;  %p336_p6 = scmp.lt.s32.totalorder %s200_s23, %s200_s23 }
  0x14   :  { %43 = vperm.xlu1 %310, %v29_v5   ;;  %40 = vperm.xlu0 %309, %v28_v6   ;;  %v78_v18 = vld [vmem:[#allocation2 + $0x48] sm:$0xff]  ;;  %v93_v19 = vld [vmem:[#allocation2 + $0xc0] sm:$0xff]  ;;  %v92_v21 = vld [vmem:[#allocation2 + $0xb8] sm:$0xff]  ;;  %p332_p5 = scmp.ne.s32.totalorder %s200_s23, %s331_s24  ;;  %p337_p7 = scmp.lt.s32.totalorder %s331_s24, %s331_s24 }
  0x15   :  { %230 = vmatpush3.msra.mxu0 %v83_v8  ;;  %288 = vmatpush3.msra.mxu1 %v83_v8  ;;  %v77_v20 = vld [vmem:[#allocation2 + $0x40] sm:$0xff]  ;;  %v76_v22 = vld [vmem:[#allocation2 + $0x38] sm:$0xff]  ;;  %v91_v23 = vld [vmem:[#allocation2 + $0xb0] sm:$0xff] }
  0x16   :  { %231 = vmatprep.subr.mxu0 %v98_v9  ;;  %273 = vmatprep.subr.mxu1 %v98_v9  ;;  %v75_v24 = vld [vmem:[#allocation2 + $0x30] sm:$0xff]  ;;  %v90_v25 = vld [vmem:[#allocation2 + $0xa8] sm:$0xff]  ;;  %v89_v27 = vld [vmem:[#allocation2 + $0xa0] sm:$0xff]  ;;  %p338_p8 = por %p337_p7, %p336_p6 }
  0x17   :  { %232 = vmatpush3.msra.mxu0 %v82_v10  ;;  %289 = vmatpush3.msra.mxu1 %v82_v10  ;;  %v74_v26 = vld [vmem:[#allocation2 + $0x28] sm:$0xff]  ;;  %v73_v28 = vld [vmem:[#allocation2 + $0x20] sm:$0xff]  ;;  %v88_v29 = vld [vmem:[#allocation2 + $0x98] sm:$0xff] }
  0x18   :  { %233 = vmatprep.subr.mxu0 %v97_v11  ;;  %274 = vmatprep.subr.mxu1 %v97_v11  ;;  %v72_v30 = vld [vmem:[#allocation2 + $0x18] sm:$0xff]  ;;  %v87_v31 = vld [vmem:[#allocation2 + $0x90] sm:$0xff]  ;;  %v86_v33 = vld [vmem:[#allocation2 + $0x88] sm:$0xff]  ;;  %p339_p9 = pnand %p338_p8, %p332_p5 }
  0x19   :  { %234 = vmatpush3.msra.mxu0 %v81_v12  ;;  %290 = vmatpush3.msra.mxu1 %v81_v12  ;;  %v71_v32 = vld [vmem:[#allocation2 + $0x10] sm:$0xff]  ;;  %v70_v34 = vld [vmem:[#allocation2 + $0x8] sm:$0xff]  ;;  %v85_v35 = vld [vmem:[#allocation2 + $0x80] sm:$0xff] }
  0x1a   :  { %235 = vmatprep.subr.mxu0 %v96_v13  ;;  %275 = vmatprep.subr.mxu1 %v96_v13  ;;  %v69_v36 = vld [vmem:[#allocation2] sm:$0xff] }
  0x1b   :  { %236 = vmatpush3.msra.mxu0 %v80_v14  ;;  %291 = vmatpush3.msra.mxu1 %v80_v14 }
  0x1c   :  { %237 = vmatprep.subr.mxu0 %v95_v15  ;;  %276 = vmatprep.subr.mxu1 %v95_v15 }
  0x1d   :  { %238 = vmatpush3.msra.mxu0 %v79_v16  ;;  %292 = vmatpush3.msra.mxu1 %v79_v16 }
  0x1e   :  { %239 = vmatprep.subr.mxu0 %v94_v17  ;;  %277 = vmatprep.subr.mxu1 %v94_v17 }
  0x1f   :  { %240 = vmatpush3.msra.mxu0 %v78_v18  ;;  %293 = vmatpush3.msra.mxu1 %v78_v18 }
  0x20   :  { %241 = vmatprep.subr.mxu0 %v93_v19  ;;  %278 = vmatprep.subr.mxu1 %v93_v19 }
  0x21   :  { %242 = vmatpush3.msra.mxu0 %v77_v20  ;;  %294 = vmatpush3.msra.mxu1 %v77_v20 }
  0x22   :  { %243 = vmatprep.subr.mxu0 %v92_v21  ;;  %279 = vmatprep.subr.mxu1 %v92_v21 }
  0x23   :  { %244 = vmatpush3.msra.mxu0 %v76_v22  ;;  %295 = vmatpush3.msra.mxu1 %v76_v22 }
  0x24   :  { %245 = vmatprep.subr.mxu0 %v91_v23  ;;  %280 = vmatprep.subr.mxu1 %v91_v23 }
  0x25   :  { %246 = vmatpush3.msra.mxu0 %v75_v24  ;;  %296 = vmatpush3.msra.mxu1 %v75_v24 }
  0x26   :  { %247 = vmatprep.subr.mxu0 %v90_v25  ;;  %281 = vmatprep.subr.mxu1 %v90_v25 }
  0x27   :  { %248 = vmatpush3.msra.mxu0 %v74_v26  ;;  %297 = vmatpush3.msra.mxu1 %v74_v26 }
  0x28   :  { %249 = vmatprep.subr.mxu0 %v89_v27  ;;  %282 = vmatprep.subr.mxu1 %v89_v27 }
  0x29   :  { %250 = vmatpush3.msra.mxu0 %v73_v28  ;;  %298 = vmatpush3.msra.mxu1 %v73_v28 }
  0x2a   :  { %251 = vmatprep.subr.mxu0 %v88_v29  ;;  %283 = vmatprep.subr.mxu1 %v88_v29 }
  0x2b   :  { %252 = vmatpush3.msra.mxu0 %v72_v30  ;;  %299 = vmatpush3.msra.mxu1 %v72_v30 }
  0x2c   :  { %253 = vmatprep.subr.mxu0 %v87_v31  ;;  %284 = vmatprep.subr.mxu1 %v87_v31 }
  0x2d   :  { %254 = vmatpush3.msra.mxu0 %v71_v32  ;;  %300 = vmatpush3.msra.mxu1 %v71_v32 }
  0x2e   :  { %255 = vmatprep.subr.mxu0 %v86_v33  ;;  %285 = vmatprep.subr.mxu1 %v86_v33 }
  0x2f   :  { %256 = vmatpush3.msra.mxu0 %v70_v34  ;;  %301 = vmatpush3.msra.mxu1 %v70_v34 }
  0x30   :  { %257 = vmatprep.subr.mxu0 %v85_v35  ;;  %286 = vmatprep.subr.mxu1 %v85_v35 }
  0x31   :  { %258 = vmatpush3.msra.mxu0 %v69_v36  ;;  %302 = vmatpush3.msra.mxu1 %v69_v36 }
  0x8b   :  { %v38_v40 = vpop.permute.xlu1 %37  ;;  %v35_v41 = vpop.permute.xlu0 %34 }
  0x8c   :  { %vm48_vm0 = vcmp.eq.s32.totalorder %v38_v40, %v32_v39  ;;  %vm45_vm1 = vcmp.eq.s32.totalorder %v35_v41, %v31_v38  ;;  %vm46_vm2 = vcmp.eq.s32.totalorder %v35_v41, %v32_v39  ;;  %vm47_vm3 = vcmp.eq.s32.totalorder %v38_v40, %v31_v38 }
  0x8d   :  { %219 = vmatprep.mubr.msk.f32.mxu0 %vm46_vm2, %v359_v42 }
  0x8e   :  { %220 = vmatmul.mubr.msk.f32.vlgmr.msra.gmra.mxu0 %vm45_vm1, %v359_v42 }
  0x8f   :  { %v44_v43 = vpop.permute.xlu1 %43  ;;  %v41_v44 = vpop.permute.xlu0 %40  ;;  %221 = vmatprep.mubr.msk.f32.mxu0 %vm48_vm0, %v359_v42 }
  0x90   :  { %vm49_vm4 = vcmp.eq.s32.totalorder %v41_v44, %v31_v38  ;;  %vm50_vm5 = vcmp.eq.s32.totalorder %v41_v44, %v32_v39  ;;  %vm52_vm6 = vcmp.eq.s32.totalorder %v44_v43, %v32_v39  ;;  %vm51_vm7 = vcmp.eq.s32.totalorder %v44_v43, %v31_v38 }
  0x91   :  { %223 = vmatprep.mubr.msk.f32.mxu1 %vm50_vm5, %v359_v42 }
  0x92   :  { %222 = vmatmul.mubr.msk.f32.gmra.mxu0 %vm47_vm3, %v359_v42  ;;  %224 = vmatmul.mubr.msk.f32.vlgmr.msra.gmra.mxu1 %vm49_vm4, %v359_v42 }
  0x93   :  { %225 = vmatprep.mubr.msk.f32.mxu1 %vm52_vm6, %v359_v42 }
  0x96   :  { %226 = vmatmul.mubr.msk.f32.gmra.mxu1 %vm51_vm7, %v359_v42 }
 0x14e   :  { %v259_v45 = vpop.f32.mrf.mxu0 }
 0x150   :  { %v260_v46 = vpop.f32.mrf.mxu0 }
 0x151   :  { %v261_v47 = vadd.f32 %v260_v46, %v259_v45 }
 0x152   :  { %v262_v48 = vpop.f32.mrf.mxu0  ;;  %v265_v49 = vpop.f32.mrf.mxu1 }
 0x153   :  { %v186_v50 = vmul.f32 11.313708, %v261_v47 }
 0x154   :  { %v263_v51 = vpop.f32.mrf.mxu0  ;;  %v266_v52 = vpop.f32.mrf.mxu1 }
 0x155   :  { %190 = vst [vmem:[#allocation5] sm:$0xff] %v186_v50  ;;  %v264_v53 = vadd.f32 %v263_v51, %v262_v48  ;;  %v267_v54 = vadd.f32 %v266_v52, %v265_v49 }
 0x156   :  { %v268_v55 = vpop.f32.mrf.mxu1 }
 0x157   :  { %v187_v56 = vmul.f32 11.313708, %v264_v53  ;;  %v188_v57 = vmul.f32 11.313708, %v267_v54 }
 0x158   :  { %v269_v58 = vpop.f32.mrf.mxu1 }
 0x159   :  { %191 = vst [vmem:[#allocation5 + $0x8] sm:$0xff] %v187_v56  ;;  %192 = vst [vmem:[#allocation5 + $0x10] sm:$0xff] %v188_v57  ;;  %v270_v59 = vadd.f32 %v269_v58, %v268_v55 }
 0x15b   :  { %v189_v60 = vmul.f32 11.313708, %v270_v59 }
 0x15d   :  { %193 = vst [vmem:[#allocation5 + $0x18] sm:$0xff] %v189_v60 }
 0x15e   :  { %342 = shalt.err (!%p339_p9)
}
 0x15f   :  { %205 = dma.vmem_to_hbm [thread:$0]  %s200_s23, 512, %s402_s2, [#allocation4], %s356_s12, %s356_s12, %s357_s13  }
 0x160   :  { %353 = dma.done.wait [#allocation4], 512  }
 0x161   :  { %354 = vsyncadd [#allocation4], 4294966784 }
 0x162   :  { %209 = vsyncpa [#allocation3], 1 }
 0x163   :  { %210 = vsyncpa [#allocation4], 1 }

</bundles_post_ra>
